<compile_context>
chip_gen: v6e
topology: v6e:2x2x1
jax: 0.10.0
libtpu: 0.0.40
codegen_flags: <defaults>
</compile_context>

<pallas_src>
import jax
import jax.numpy as jnp
from jax.experimental import pallas as pl
from jax.experimental.pallas import tpu as pltpu


def gcn_ode_kernel(g_ref, x_ref, w1_ref, b1_ref, w2_ref, b2_ref,
                   wo_ref, bo_ref, o_ref):
    """One batch block (block_b batch elements) per grid step.

    g_ref : (R, R)     block-diagonal normalized graph, R = block_b * N
    x_ref : (R, C)     per-node features, rows ordered (batch, node)
    w1_ref: (C, H), b1_ref: (1, H)
    w2_ref: (H, H), b2_ref: (1, H)
    wo_ref: (1, H)     output weight as a row (VPU reduce, not MXU)
    bo_ref: (1,)       output bias scalar in SMEM
    o_ref : (1, 1, R)  lane-dense output tile
    """
    # MLP (input_layer): batch folded into the matmul row dimension -> two
    # big row-major MXU matmuls, no in-kernel reshapes.
    h1 = jnp.tanh(
        jnp.dot(x_ref[...], w1_ref[...], preferred_element_type=jnp.float32)
        + b1_ref[...])
    h2 = jnp.maximum(
        jnp.dot(h1, w2_ref[...], preferred_element_type=jnp.float32)
        + b2_ref[...], 0.0)

    # Graph propagation for the whole batch block as ONE matmul with the
    # block-diagonal normalized adjacency; relu(G_blk @ H2) is the Euler ODE
    # result (zero initial state).
    h3 = jnp.maximum(
        jnp.dot(g_ref[...], h2, preferred_element_type=jnp.float32), 0.0)

    # Output Linear(hid, 1): VPU multiply + lane reduce (a 1-column MXU matmul
    # would waste 127/255 MXU columns).  Bias is a scalar SMEM read.
    col = jnp.sum(h3 * wo_ref[...], axis=-1, keepdims=True) + bo_ref[0]  # (R, 1)

    # Single small transpose so the store is lane-dense (R lanes), not an
    # R-row, 1-lane masked store.
    o_ref[0] = col.T                                                     # (1, R)


def gcn_ode_forward(A, flow_x, params, *, num_blocks=None):
    """Full GCN_ODE forward.  Returns shape (B, N, 1, 1, 1)."""
    w1t, b1, w2t, b2, wot, bot = params
    B, N = flow_x.shape[0], flow_x.shape[1]
    x = flow_x.reshape(B, N, -1).astype(jnp.float32)                # (B, N, C)
    C = x.shape[-1]
    hid = w1t.shape[1]

    # Hoisted, grid-invariant graph normalization: G = D^{-1}(A + I).
    a_hat = A.astype(jnp.float32) + jnp.eye(N, dtype=jnp.float32)
    deg = jnp.sum(a_hat, axis=1, keepdims=True)
    inv_deg = jnp.where(deg == 0.0, 0.0, 1.0 / deg)                  # inf -> 0 rule
    g = inv_deg * a_hat                                              # (N, N)

    # Grid sizing: default 2 steps so v7x's two TensorCores can split the
    # "parallel" batch axis; use num_blocks=1 on v5e/v6e if desired.
    if num_blocks is None:
        num_blocks = 2 if B >= 2 else 1
    num_blocks = max(1, min(num_blocks, B))
    block_b = pl.cdiv(B, num_blocks)
    b_pad = num_blocks * block_b
    if b_pad != B:
        x = jnp.pad(x, ((0, b_pad - B), (0, 0), (0, 0)))             # zero rows, sliced off later
    R = block_b * N                                                  # matmul rows per grid step
    assert R % 8 == 0, "block_b * N must be a multiple of 8 (sublane tiling)"

    # HBM-side layout plumbing (free): flatten rows, build block-diagonal G.
    x_rows = x.reshape(num_blocks * R, C)                            # rows ordered (block, b, n)
    g_blk = jnp.kron(jnp.eye(block_b, dtype=jnp.float32), g)         # (R, R), grid-invariant
    wo_row = wot.reshape(1, hid).astype(jnp.float32)                 # (1, H)
    bo_s = bot.reshape(1).astype(jnp.float32)                        # scalar for SMEM

    out = pl.pallas_call(
        gcn_ode_kernel,
        out_shape=jax.ShapeDtypeStruct((num_blocks, 1, R), jnp.float32),
        grid_spec=pltpu.PrefetchScalarGridSpec(
            num_scalar_prefetch=0,
            grid=(num_blocks,),
            in_specs=[
                pl.BlockSpec((R, R), lambda i: (0, 0)),              # G_blk (grid-invariant)
                pl.BlockSpec((R, C), lambda i: (i, 0)),              # X row block
                pl.BlockSpec((C, hid), lambda i: (0, 0)),            # W1^T
                pl.BlockSpec((1, hid), lambda i: (0, 0)),            # b1
                pl.BlockSpec((hid, hid), lambda i: (0, 0)),          # W2^T
                pl.BlockSpec((1, hid), lambda i: (0, 0)),            # b2
                pl.BlockSpec((1, hid), lambda i: (0, 0)),            # Wo row
                pl.BlockSpec(memory_space=pltpu.SMEM),               # bo scalar
            ],
            out_specs=pl.BlockSpec((1, 1, R), lambda i: (i, 0, 0)),  # lane-dense tile
        ),
        compiler_params=pltpu.CompilerParams(
            dimension_semantics=("parallel",)),                      # v7x: 2 TCs split batch
    )(g_blk, x_rows, w1t.astype(jnp.float32), b1.astype(jnp.float32),
      w2t.astype(jnp.float32), b2.astype(jnp.float32), wo_row, bo_s)

    # Drop batch padding, then reshape to PyTorch's output layout:
    # output_layer(...) -> (B, N, 1, 1); .unsqueeze(2) -> (B, N, 1, 1, 1)
    out = out.reshape(b_pad, N)[:B]
    return out.reshape(B, N, 1, 1, 1)


def reference_forward(A, flow_x, params):
    """Pure-JAX reference of the same semantics for a sanity check."""
    w1t, b1, w2t, b2, wot, bot = params
    B, N = flow_x.shape[0], flow_x.shape[1]
    x = flow_x.reshape(B, N, -1).astype(jnp.float32)
    a_hat = A.astype(jnp.float32) + jnp.eye(N, dtype=jnp.float32)
    deg = jnp.sum(a_hat, axis=1, keepdims=True)
    inv_deg = jnp.where(deg == 0.0, 0.0, 1.0 / deg)
    g = inv_deg * a_hat
    h1 = jnp.tanh(x @ w1t + b1)
    h2 = jax.nn.relu(h1 @ w2t + b2)
    h3 = jax.nn.relu(jnp.einsum("ij,bjc->bic", g, h2))
    out = h3 @ wot + bot
    return out.reshape(B, N, 1, 1, 1)


if __name__ == "__main__":
    # Small shapes consistent with the module: output_layer = Linear(6, 1)
    # forces hid_c = 6; choose flow_x (B, N, T, D) with T*D = in_c = 6.
    B, N, T, D = 8, 16, 6, 1
    in_c, hid_c = T * D, 6

    key = jax.random.PRNGKey(0)
    k_a, k_x, k_w1, k_b1, k_w2, k_b2, k_wo, k_bo = jax.random.split(key, 8)

    # Deterministic random symmetric 0/1 adjacency (no self loops; added in G).
    a_rand = jax.random.uniform(k_a, (N, N))
    A = (((a_rand + a_rand.T) * 0.5) > 0.6).astype(jnp.float32)
    A = A * (1.0 - jnp.eye(N, dtype=jnp.float32))

    flow_x = jax.random.normal(k_x, (B, N, T, D), dtype=jnp.float32)

    # Parameters (stored already transposed: y = x @ W^T + b  ->  x @ Wt + b).
    w1t = 0.2 * jax.random.normal(k_w1, (in_c, hid_c), dtype=jnp.float32)
    b1 = 0.1 * jax.random.normal(k_b1, (1, hid_c), dtype=jnp.float32)
    w2t = 0.2 * jax.random.normal(k_w2, (hid_c, hid_c), dtype=jnp.float32)
    b2 = 0.1 * jax.random.normal(k_b2, (1, hid_c), dtype=jnp.float32)
    wot = 0.2 * jax.random.normal(k_wo, (hid_c, 1), dtype=jnp.float32)
    bot = 0.1 * jax.random.normal(k_bo, (1, 1), dtype=jnp.float32)
    params = (w1t, b1, w2t, b2, wot, bot)

    out = gcn_ode_forward(A, flow_x, params)   # default: 2 grid steps (v7x-friendly)
    out = jax.block_until_ready(out)

    ref = reference_forward(A, flow_x, params)
    assert out.shape == (B, N, 1, 1, 1), out.shape
    assert jnp.allclose(out, ref, atol=1e-5, rtol=1e-5), (
        f"max abs err {jnp.max(jnp.abs(out - ref))}")

    print("KERNEL_OK")
</pallas_src>

<mosaic_0001>
module attributes {stable_mosaic.version = 11 : i64} {
  func.func @gcn_ode_kernel(%arg0: i32, %arg1: memref<64x64xf32, #tpu.memory_space<vmem>>, %arg2: memref<64x6xf32, #tpu.memory_space<vmem>>, %arg3: memref<6x6xf32, #tpu.memory_space<vmem>>, %arg4: memref<1x6xf32, #tpu.memory_space<vmem>>, %arg5: memref<6x6xf32, #tpu.memory_space<vmem>>, %arg6: memref<1x6xf32, #tpu.memory_space<vmem>>, %arg7: memref<1x6xf32, #tpu.memory_space<vmem>>, %arg8: memref<1xf32, #tpu.memory_space<smem>>, %arg9: memref<1x1x64xf32, #tpu.memory_space<vmem>>) attributes {dimension_semantics = [#tpu.dimension_semantics<parallel>], iteration_bounds = array<i64: 2>, scalar_prefetch = 0 : i64, scratch_operands = 0 : i64, tpu.core_type = #tpu.core_type<tc>, window_params = [{pipeline_mode = #tpu.pipeline_mode<synchronous>, transform_indices = @transform_0, window_bounds = array<i64: 64, 64>}, {transform_indices = @transform_1, window_bounds = array<i64: 64, 6>}, {pipeline_mode = #tpu.pipeline_mode<synchronous>, transform_indices = @transform_2, window_bounds = array<i64: 6, 6>}, {pipeline_mode = #tpu.pipeline_mode<synchronous>, transform_indices = @transform_3, window_bounds = array<i64: 1, 6>}, {pipeline_mode = #tpu.pipeline_mode<synchronous>, transform_indices = @transform_4, window_bounds = array<i64: 6, 6>}, {pipeline_mode = #tpu.pipeline_mode<synchronous>, transform_indices = @transform_5, window_bounds = array<i64: 1, 6>}, {pipeline_mode = #tpu.pipeline_mode<synchronous>, transform_indices = @transform_6, window_bounds = array<i64: 1, 6>}, {transform_indices = @transform_7, window_bounds = array<i64: 1>}, {transform_indices = @transform_8, window_bounds = array<i64: 1, 1, 64>}]} {
    %c0 = arith.constant 0 : index
    %c0_0 = arith.constant 0 : index
    %0 = vector.load %arg2[%c0, %c0_0] : memref<64x6xf32, #tpu.memory_space<vmem>>, vector<64x6xf32>
    %c0_1 = arith.constant 0 : index
    %c0_2 = arith.constant 0 : index
    %1 = vector.load %arg3[%c0_1, %c0_2] : memref<6x6xf32, #tpu.memory_space<vmem>>, vector<6x6xf32>
    %cst = arith.constant dense<0.000000e+00> : vector<64x6xf32>
    %2 = tpu.matmul %0, %1, %cst {dimension_numbers = #tpu.dot_dimension_numbers<[1], [0], [0], [1], [0, 0, 1, 1], [], []>} : vector<64x6xf32>, vector<6x6xf32>, vector<64x6xf32> -> vector<64x6xf32>
    %c0_3 = arith.constant 0 : index
    %c0_4 = arith.constant 0 : index
    %3 = vector.load %arg4[%c0_3, %c0_4] : memref<1x6xf32, #tpu.memory_space<vmem>>, vector<1x6xf32>
    %4 = vector.broadcast %3 : vector<1x6xf32> to vector<64x6xf32>
    %5 = arith.addf %2, %4 : vector<64x6xf32>
    %6 = math.tanh %5 : vector<64x6xf32>
    %c0_5 = arith.constant 0 : index
    %c0_6 = arith.constant 0 : index
    %7 = vector.load %arg5[%c0_5, %c0_6] : memref<6x6xf32, #tpu.memory_space<vmem>>, vector<6x6xf32>
    %cst_7 = arith.constant dense<0.000000e+00> : vector<64x6xf32>
    %8 = tpu.matmul %6, %7, %cst_7 {dimension_numbers = #tpu.dot_dimension_numbers<[1], [0], [0], [1], [0, 0, 1, 1], [], []>} : vector<64x6xf32>, vector<6x6xf32>, vector<64x6xf32> -> vector<64x6xf32>
    %c0_8 = arith.constant 0 : index
    %c0_9 = arith.constant 0 : index
    %9 = vector.load %arg6[%c0_8, %c0_9] : memref<1x6xf32, #tpu.memory_space<vmem>>, vector<1x6xf32>
    %10 = vector.broadcast %9 : vector<1x6xf32> to vector<64x6xf32>
    %11 = arith.addf %8, %10 : vector<64x6xf32>
    %cst_10 = arith.constant 0.000000e+00 : f32
    %12 = vector.broadcast %cst_10 : f32 to vector<64x6xf32>
    %13 = arith.maximumf %11, %12 : vector<64x6xf32>
    %c0_11 = arith.constant 0 : index
    %c0_12 = arith.constant 0 : index
    %14 = vector.load %arg1[%c0_11, %c0_12] : memref<64x64xf32, #tpu.memory_space<vmem>>, vector<64x64xf32>
    %cst_13 = arith.constant dense<0.000000e+00> : vector<64x6xf32>
    %15 = tpu.matmul %14, %13, %cst_13 {dimension_numbers = #tpu.dot_dimension_numbers<[1], [0], [0], [1], [0, 0, 1, 1], [], []>} : vector<64x64xf32>, vector<64x6xf32>, vector<64x6xf32> -> vector<64x6xf32>
    %cst_14 = arith.constant 0.000000e+00 : f32
    %16 = vector.broadcast %cst_14 : f32 to vector<64x6xf32>
    %17 = arith.maximumf %15, %16 : vector<64x6xf32>
    %c0_15 = arith.constant 0 : index
    %c0_16 = arith.constant 0 : index
    %18 = vector.load %arg7[%c0_15, %c0_16] : memref<1x6xf32, #tpu.memory_space<vmem>>, vector<1x6xf32>
    %19 = vector.broadcast %18 : vector<1x6xf32> to vector<64x6xf32>
    %20 = arith.mulf %17, %19 : vector<64x6xf32>
    %cst_17 = arith.constant dense<0.000000e+00> : vector<64xf32>
    %21 = vector.multi_reduction <add>, %20, %cst_17 [1] : vector<64x6xf32> to vector<64xf32>
    %22 = vector.shape_cast %21 : vector<64xf32> to vector<64x1xf32>
    %c0_18 = arith.constant 0 : index
    %23 = memref.load %arg8[%c0_18] : memref<1xf32, #tpu.memory_space<smem>>
    %24 = vector.broadcast %23 : f32 to vector<64x1xf32>
    %25 = arith.addf %22, %24 : vector<64x1xf32>
    %26 = tpu.transpose %25, [1, 0] : vector<64x1xf32> -> vector<1x64xf32>
    %c0_19 = arith.constant 0 : index
    %c0_20 = arith.constant 0 : index
    %c0_21 = arith.constant 0 : index
    %27 = vector.load %arg9[%c0_19, %c0_20, %c0_21] : memref<1x1x64xf32, #tpu.memory_space<vmem>>, vector<1x1x64xf32>
    %28 = vector.shape_cast %27 : vector<1x1x64xf32> to vector<1x64xf32>
    %29 = vector.shape_cast %26 : vector<1x64xf32> to vector<1x1x64xf32>
    tpu.vector_store %arg9[%c0_19, %c0_20, %c0_21], %29 {strides = array<i32>} : memref<1x1x64xf32, #tpu.memory_space<vmem>>, vector<1x1x64xf32>,
    return
  }
  func.func @transform_0(%arg0: i32) -> (i32, i32) {
    %c0_i32 = arith.constant 0 : i32
    %c0_i32_0 = arith.constant 0 : i32
    %c0_i32_1 = arith.constant 0 : i32
    return %c0_i32, %c0_i32_0 : i32, i32
  }
  func.func @transform_1(%arg0: i32) -> (i32, i32) {
    %c0_i32 = arith.constant 0 : i32
    %c0_i32_0 = arith.constant 0 : i32
    return %arg0, %c0_i32 : i32, i32
  }
  func.func @transform_2(%arg0: i32) -> (i32, i32) {
    %c0_i32 = arith.constant 0 : i32
    %c0_i32_0 = arith.constant 0 : i32
    %c0_i32_1 = arith.constant 0 : i32
    return %c0_i32, %c0_i32_0 : i32, i32
  }
  func.func @transform_3(%arg0: i32) -> (i32, i32) {
    %c0_i32 = arith.constant 0 : i32
    %c0_i32_0 = arith.constant 0 : i32
    %c0_i32_1 = arith.constant 0 : i32
    return %c0_i32, %c0_i32_0 : i32, i32
  }
  func.func @transform_4(%arg0: i32) -> (i32, i32) {
    %c0_i32 = arith.constant 0 : i32
    %c0_i32_0 = arith.constant 0 : i32
    %c0_i32_1 = arith.constant 0 : i32
    return %c0_i32, %c0_i32_0 : i32, i32
  }
  func.func @transform_5(%arg0: i32) -> (i32, i32) {
    %c0_i32 = arith.constant 0 : i32
    %c0_i32_0 = arith.constant 0 : i32
    %c0_i32_1 = arith.constant 0 : i32
    return %c0_i32, %c0_i32_0 : i32, i32
  }
  func.func @transform_6(%arg0: i32) -> (i32, i32) {
    %c0_i32 = arith.constant 0 : i32
    %c0_i32_0 = arith.constant 0 : i32
    %c0_i32_1 = arith.constant 0 : i32
    return %c0_i32, %c0_i32_0 : i32, i32
  }
  func.func @transform_7(%arg0: i32) -> i32 {
    %c0_i32 = arith.constant 0 : i32
    %c0_i32_0 = arith.constant 0 : i32
    return %c0_i32 : i32
  }
  func.func @transform_8(%arg0: i32) -> (i32, i32, i32) {
    %c0_i32 = arith.constant 0 : i32
    %c0_i32_0 = arith.constant 0 : i32
    %c0_i32_1 = arith.constant 0 : i32
    return %arg0, %c0_i32, %c0_i32_0 : i32, i32, i32
  }
}

</mosaic_0001>

<bundles_post_ra>
// kernel: tpu_custom_call.1
= control target key start
LH: loop header
LB: loop body
LE: loop exit
PB: predicated region body
PF: predicated region fallthrough
CT: control target
= control target key end

     0   :  { %s1387_s0 = inlined_call_operand.vmem [shape: f32[64,64], index: 0, kind: input, shape index: {}]   ;;  %s1388_s1 = inlined_call_operand.vmem [shape: f32[128,6], index: 1, kind: input, shape index: {}]   ;;  %s1389_s2 = inlined_call_operand.vmem [shape: f32[6,6], index: 2, kind: input, shape index: {}]   ;;  %s1390_s3 = inlined_call_operand.vmem [shape: f32[1,6], index: 3, kind: input, shape index: {}]   ;;  %s1391_s4 = inlined_call_operand.vmem [shape: f32[6,6], index: 4, kind: input, shape index: {}]   ;;  %s1392_s5 = inlined_call_operand.vmem [shape: f32[1,6], index: 5, kind: input, shape index: {}]   ;;  %s1393_s6 = inlined_call_operand.vmem [shape: f32[1,6], index: 6, kind: input, shape index: {}]   ;;  %s1394_s7 = inlined_call_operand.<no memory space> [shape: f32[1], index: 7, kind: input, shape index: {}]   ;;  %s1395_s8 = inlined_call_operand.hbm [shape: f32[2,1,64], index: 8, kind: output, shape index: {}]  }
   0x1   :  { %13 = sst [smem:[#allocation2]] %s1394_s7 }
   0x2   :  { %14 = vsyncpa [#allocation4], 0 }
   0x3   :  { %16 = vsyncpa [#allocation4 + $0x1], 0  ;;  %s1220_s29 = smov 0   ;;  %s1222_s30 = smov 0  }
   0x4   :  { %s1224_s9 = smov 0   ;;  %s1226_s10 = smov 0  }
   0x5 LB: > { %s1241_s7 = sadd.s32 4294967295, %s1169_s10   ;;  %s909_s11 = sadd.s32 4294967294, %s1169_s10   ;;  %s1169_s10 = sphi %s1226_s10, %s1401_s10   ;;  %s1165_s9 = sphi %s1224_s9, %s1400_s9   ;;  %s1161_s30 = sphi %s1222_s30, %s1399_s30   ;;  %s1157_s29 = sphi %s1220_s29, %s1398_s29  }
   0x6   : > { %s1245_s12 = sadd.s32 1, %s1169_s10   ;;  %s202_s13 = sadd.s32 1, %s1165_s9 }
   0x7   : > { %s199_s14 = ssub.s32 %s1169_s10, %s1245_s12  ;;  %p212_p0 = scmp.ne.s32.totalorder %s1165_s9, %s1161_s30 }
   0x8   : > { %p200_p1 = scmp.eq.s32.totalorder %s199_s14, 0  ;;  %p213_p2 = scmp.eq.s32.totalorder %s1241_s7, 1 }
   0x9   : > { %p218_p3 = scmp.ne.s32.totalorder %s1161_s30, %s1157_s29  ;;  %p219_p4 = scmp.eq.s32.totalorder %s909_s11, 1 }
   0xa   : > { %s1256_s15 = scalar_select %p200_p1, %s1165_s9, %s202_s13  }
   0xb   : > { %p1258_p5 = por %p213_p2, %p212_p0  ;;  %p1262_p6 = por %p219_p4, %p218_p3 }
   0xc   : > { %p912_p7 = scmp.ge.s32.totalorder %s1169_s10, 1  ;;  %p267_p8 = scmp.lt.s32.totalorder %s1169_s10, 3 }
   0xe   : > { %p268_p9 = pnand %p912_p7, %p267_p8 }
   0xf   : > { %s913_s20 = sshll.u32 (!%p268_p9), %s1241_s7, 3  ;;  %s298_s22 = sand.u32 (!%p268_p9), 1, %s1161_s30  }
  0x10   : > { %271 = sbr.rel (%p268_p9) target bundleno = 941 (0x3ad), region = 52  ;;  %p301_p10 = scmp.lt.s32.totalorder (!%p268_p9), %s913_s20, 15 }
  0x11   : > { %s944_s23 = sshll.u32 (!%p268_p9), %s1241_s7, 4  ;;  %s842_s11 = scalar_lea.sflag (!%p268_p9), [#allocation4], %s298_s22 }
  0x12   : > { %s1352_s28 = scalar_lea.hbm (!%p268_p9), %s1395_s8, %s944_s23  ;;  %s1171_s14 = smov (!%p268_p9), [#allocation3]  }
  0x13   : > { %s1113_s18 = sshll.u32 (!%p268_p9), %s1171_s14, 4  ;;  %s1114_s18 = int_to_ptr.vmem [resolvable:$false] %s1113_s18 }
  0x14   : > { %s1115_s7 = scalar_lea.vmem (!%p268_p9), %s1114_s18, 32 }
  0x15   : > { %v314_v0 = vld [vmem:[%s1389_s2] sm:$0x3f]  ;;  %vm347_vm0 = vcmask 1045504   ;;  %s1403_s20 = smov (!%p301_p10, %s913_s20), 15  ;;  %vm322_vm1 = vcmask 48128   ;;  %vm620_vm2 = vcmask 523264  }
  0x16   : > { %981 = vmatprep.subr.msk.mxu0 %vm347_vm0, %v314_v0  ;;  %s914_s21 = sshll.u32 %s1403_s20, 3  ;;  %v464_v9 = vld [vmem:[%s1391_s4] sm:$0x3f]  ;;  %v613_v62 = vld [vmem:[%s1387_s0 + $0x8] sm:$0xff]  ;;  %vm839_vm3 = vcmask 516096  }
  0x17   : > { %982 = vmatpush3.msk.msra.mxu0 %vm347_vm0, %v314_v0  ;;  %s304_s24 = scalar_lea.vmem %s1388_s1, %s914_s21  ;;  %995 = vmatprep.subr.msk.mxu1 %vm347_vm0, %v464_v9  ;;  %v915_v10 = vld [vmem:[%s1390_s3] ss:$0 sm:$0xff]  ;;  %v617_v63 = vld [vmem:[%s1387_s0 + $0x28] sm:$0xff]  ;;  %v614_v0 = vld [vmem:[%s1387_s0 + $0x10] sm:$0xff]  ;;  %s797_s21 = sld [smem:[#allocation2]] }
  0x18   : > { %v306_v1 = vld [vmem:[%s304_s24] sm:$0xff]  ;;  %v307_v2 = vld [vmem:[%s304_s24 + $0x8] sm:$0xff]  ;;  %v308_v3 = vld [vmem:[%s304_s24 + $0x10] sm:$0xff]  ;;  %996 = vmatpush3.msk.msra.mxu1 %vm347_vm0, %v464_v9 }
  0x19   : > { %983 = vmatprep.mubr.msk.f32.mxu0 %vm322_vm1, %v306_v1  ;;  %v309_v4 = vld [vmem:[%s304_s24 + $0x18] sm:$0xff]  ;;  %v310_v5 = vld [vmem:[%s304_s24 + $0x20] sm:$0xff]  ;;  %v311_v6 = vld [vmem:[%s304_s24 + $0x28] sm:$0xff] }
  0x1a   : > { %984 = vmatmul.mubr.msk.f32.vlgmr.msra.gmra.mxu0 %vm322_vm1, %v307_v2  ;;  %v312_v7 = vld [vmem:[%s304_s24 + $0x30] sm:$0xff]  ;;  %v313_v8 = vld [vmem:[%s304_s24 + $0x38] sm:$0xff]  ;;  %v612_v35 = vld [vmem:[%s1387_s0] sm:$0xff]  ;;  %s299_s24 = scalar_lea.vmem [#allocation3], %s298_s22 }
  0x1b   : > { %986 = vmatprep.mubr.msk.f32.mxu0 %vm322_vm1, %v308_v3  ;;  %v616_v36 = vld [vmem:[%s1387_s0 + $0x20] sm:$0xff]  ;;  %v618_v1 = vld [vmem:[%s1387_s0 + $0x30] sm:$0xff]  ;;  %v615_v2 = vld [vmem:[%s1387_s0 + $0x18] sm:$0xff]  ;;  %s854_s25 = sshll.u32 %s299_s24, 4  ;;  %s855_s25 = int_to_ptr.vmem [resolvable:$true] %s854_s25 }
  0x1c   : > { %v925_v43 = vld [vmem:[%s1392_s5] ss:$0 sm:$0xff]  ;;  %v619_v3 = vld [vmem:[%s1387_s0 + $0x38] sm:$0xff]  ;;  %s1109_s13 = scalar_lea.vmem %s855_s25, 16  ;;  %p1116_p0 = scmp.lt.s32.totalorder %s855_s25, %s1114_s18 }
  0x1d   : > { %p1110_p11 = scmp.ne.s32.totalorder %s855_s25, %s1109_s13  ;;  %p1117_p1 = scmp.lt.s32.totalorder %s1115_s7, %s1109_s13 }
  0x1e   : > { %987 = vmatmul.mubr.msk.f32.gmra.mxu0 %vm322_vm1, %v309_v4 }
  0x1f   : > { %989 = vmatprep.mubr.msk.f32.mxu0 %vm322_vm1, %v310_v5  ;;  %p1111_p12 = pnand %p1110_p11, %p1258_p5  ;;  %p1118_p2 = por %p1117_p1, %p1116_p0 }
  0x21   : > { %p1112_p13 = pneg %p1111_p12 }
  0x22   : > { %990 = vmatmul.mubr.msk.f32.gmra.mxu0 %vm322_vm1, %v311_v6 }
  0x23   : > { %992 = vmatprep.mubr.msk.f32.mxu0 %vm322_vm1, %v312_v7  ;;  %p1119_p3 = pnand %p1118_p2, %p1112_p13 }
  0x26   : > { %993 = vmatmul.mubr.msk.f32.gmra.mxu0 %vm322_vm1, %v313_v8 }
  0x27   : > { %1025 = vmatprep.mubr.msk.f32.mxu0 %vm620_vm2, %v612_v35 }
  0xda   : > { %v985_v11 = vpop.f32.mrf.mxu0 }
  0xdb   : > { %v423_v12 = vadd.f32 %v985_v11, %v915_v10  ;;  %v943_v11 = vld [vmem:[%s1393_s6] ss:$0 sm:$0xff] }
  0xdc   : > { %v417_v13 = vpop.f32.mrf.mxu0 }
  0xdd   : > { %v418_v14 = vadd.f32 %v915_v10, %v417_v13 }
  0xde   : > { %v988_v15 = vpop.f32.mrf.mxu0 }
  0xdf   : > { %1093 = vtanh.f32 %v418_v14  ;;  %v433_v16 = vadd.f32 %v988_v15, %v915_v10 }
  0xe0   : > { %1095 = vtanh.f32 %v423_v12  ;;  %v427_v17 = vpop.f32.mrf.mxu0 }
  0xe1   : > { %v428_v18 = vadd.f32 %v915_v10, %v427_v17 }
  0xe2   : > { %v991_v19 = vpop.f32.mrf.mxu0 }
  0xe3   : > { %1097 = vtanh.f32 %v428_v18  ;;  %v443_v20 = vadd.f32 %v991_v19, %v915_v10 }
  0xe4   : > { %1099 = vtanh.f32 %v433_v16  ;;  %v437_v21 = vpop.f32.mrf.mxu0 }
  0xe5   : > { %v438_v22 = vadd.f32 %v915_v10, %v437_v21 }
  0xe6   : > { %v994_v23 = vpop.f32.mrf.mxu0 }
  0xe7   : > { %1101 = vtanh.f32 %v438_v22  ;;  %v453_v24 = vadd.f32 %v994_v23, %v915_v10 }
  0xe8   : > { %1103 = vtanh.f32 %v443_v20  ;;  %v447_v25 = vpop.f32.mrf.mxu0 }
  0xe9   : > { %v448_v26 = vadd.f32 %v915_v10, %v447_v25 }
  0xeb   : > { %1105 = vtanh.f32 %v448_v26 }
  0xec   : > { %v1094_v27 = vpop.eup %1093  ;;  %1107 = vtanh.f32 %v453_v24 }
  0xed   : > { %v1096_v28 = vpop.eup %1095  ;;  %997 = vmatprep.mubr.msk.f32.mxu1 %vm322_vm1, %v1094_v27 }
  0xee   : > { %998 = vmatmul.mubr.msk.f32.vlgmr.msra.gmra.mxu1 %vm322_vm1, %v1096_v28 }
  0xf0   : > { %v1098_v29 = vpop.eup %1097 }
  0xf1   : > { %v1100_v30 = vpop.eup %1099  ;;  %1000 = vmatprep.mubr.msk.f32.mxu1 %vm322_vm1, %v1098_v29 }
  0xf2   : > { %1001 = vmatmul.mubr.msk.f32.gmra.mxu1 %vm322_vm1, %v1100_v30 }
  0xf4   : > { %v1102_v31 = vpop.eup %1101 }
  0xf5   : > { %v1104_v32 = vpop.eup %1103  ;;  %1003 = vmatprep.mubr.msk.f32.mxu1 %vm322_vm1, %v1102_v31 }
  0xf6   : > { %1004 = vmatmul.mubr.msk.f32.gmra.mxu1 %vm322_vm1, %v1104_v32 }
  0xf8   : > { %v1106_v33 = vpop.eup %1105 }
  0xf9   : > { %v1108_v34 = vpop.eup %1107  ;;  %1006 = vmatprep.mubr.msk.f32.mxu1 %vm322_vm1, %v1106_v33 }
  0xfa   : > { %1007 = vmatmul.mubr.msk.f32.gmra.mxu1 %vm322_vm1, %v1108_v34 }
  0xfb   : > { %1031 = vmatprep.mubr.msk.f32.mxu1 %vm620_vm2, %v616_v36 }
 0x1ae   : > { %v999_v37 = vpop.f32.mrf.mxu1 }
 0x1af   : > { %v571_v56 = vadd.f32 %v999_v37, %v925_v43  ;;  %v798_v37 = vstv %s797_s21 }
 0x1b0   : > { %v565_v38 = vpop.f32.mrf.mxu1 }
 0x1b1   : > { %v566_v58 = vadd.f32 %v925_v43, %v565_v38  ;;  %v605_v60 = vmax.f32 %v571_v56, 0.0 }
 0x1b2   : > { %v1002_v39 = vpop.f32.mrf.mxu1 }
 0x1b3   : > { %v581_v52 = vadd.f32 %v1002_v39, %v925_v43  ;;  %v604_v61 = vmax.f32 %v566_v58, 0.0 }
 0x1b4   : > { %v575_v40 = vpop.f32.mrf.mxu1 }
 0x1b5   : > { %v576_v54 = vadd.f32 %v925_v43, %v575_v40  ;;  %v607_v57 = vmax.f32 %v581_v52, 0.0 }
 0x1b6   : > { %v1005_v41 = vpop.f32.mrf.mxu1 }
 0x1b7   : > { %v591_v47 = vadd.f32 %v1005_v41, %v925_v43  ;;  %v606_v59 = vmax.f32 %v576_v54, 0.0 }
 0x1b8   : > { %v585_v42 = vpop.f32.mrf.mxu1 }
 0x1b9   : > { %v586_v50 = vadd.f32 %v925_v43, %v585_v42  ;;  %v609_v53 = vmax.f32 %v591_v47, 0.0 }
 0x1ba   : > { %v1008_v44 = vpop.f32.mrf.mxu1 }
 0x1bb   : > { %v601_v45 = vadd.f32 %v1008_v44, %v925_v43  ;;  %v608_v55 = vmax.f32 %v586_v50, 0.0 }
 0x1bc   : > { %v595_v46 = vpop.f32.mrf.mxu1 }
 0x1bd   : > { %v611_v48 = vmax.f32 %v601_v45, 0.0  ;;  %v596_v49 = vadd.f32 %v925_v43, %v595_v46 }
 0x1bf   : > { %v610_v51 = vmax.f32 %v596_v49, 0.0  ;;  %1009 = vmatprep.subr.mxu0 %v611_v48  ;;  %1037 = vmatprep.subr.mxu1 %v611_v48 }
 0x1c0   : > { %1010 = vmatpush3.msra.mxu0 %v611_v48  ;;  %1045 = vmatpush3.msra.mxu1 %v611_v48 }
 0x1c1   : > { %1011 = vmatprep.subr.mxu0 %v610_v51  ;;  %1038 = vmatprep.subr.mxu1 %v610_v51 }
 0x1c2   : > { %1012 = vmatpush3.msra.mxu0 %v610_v51  ;;  %1046 = vmatpush3.msra.mxu1 %v610_v51 }
 0x1c3   : > { %1013 = vmatprep.subr.mxu0 %v609_v53  ;;  %1039 = vmatprep.subr.mxu1 %v609_v53 }
 0x1c4   : > { %1014 = vmatpush3.msra.mxu0 %v609_v53  ;;  %1047 = vmatpush3.msra.mxu1 %v609_v53 }
 0x1c5   : > { %1015 = vmatprep.subr.mxu0 %v608_v55  ;;  %1040 = vmatprep.subr.mxu1 %v608_v55 }
 0x1c6   : > { %1016 = vmatpush3.msra.mxu0 %v608_v55  ;;  %1048 = vmatpush3.msra.mxu1 %v608_v55 }
 0x1c7   : > { %1017 = vmatprep.subr.mxu0 %v607_v57  ;;  %1041 = vmatprep.subr.mxu1 %v607_v57 }
 0x1c8   : > { %1018 = vmatpush3.msra.mxu0 %v607_v57  ;;  %1049 = vmatpush3.msra.mxu1 %v607_v57 }
 0x1c9   : > { %1019 = vmatprep.subr.mxu0 %v606_v59  ;;  %1042 = vmatprep.subr.mxu1 %v606_v59 }
 0x1ca   : > { %1020 = vmatpush3.msra.mxu0 %v606_v59  ;;  %1050 = vmatpush3.msra.mxu1 %v606_v59 }
 0x1cb   : > { %1021 = vmatprep.subr.mxu0 %v605_v60  ;;  %1043 = vmatprep.subr.mxu1 %v605_v60 }
 0x1cc   : > { %1022 = vmatpush3.msra.mxu0 %v605_v60  ;;  %1051 = vmatpush3.msra.mxu1 %v605_v60 }
 0x1cd   : > { %1023 = vmatprep.subr.mxu0 %v604_v61  ;;  %1044 = vmatprep.subr.mxu1 %v604_v61 }
 0x1ce   : > { %1024 = vmatpush3.msra.mxu0 %v604_v61  ;;  %1052 = vmatpush3.msra.mxu1 %v604_v61 }
 0x1cf   : > { %1026 = vmatmul.mubr.msk.f32.vlgmr.msra.gmra.mxu0 %vm620_vm2, %v613_v62  ;;  %1032 = vmatmul.mubr.msk.f32.vlgmr.msra.gmra.mxu1 %vm620_vm2, %v617_v63 }
 0x1d0   : > { %1028 = vmatprep.mubr.msk.f32.mxu0 %vm620_vm2, %v614_v0  ;;  %1034 = vmatprep.mubr.msk.f32.mxu1 %vm620_vm2, %v618_v1 }
 0x1d3   : > { %1029 = vmatmul.mubr.msk.f32.gmra.mxu0 %vm620_vm2, %v615_v2  ;;  %1035 = vmatmul.mubr.msk.f32.gmra.mxu1 %vm620_vm2, %v619_v3 }
 0x28f   : > { %v1027_v4 = vpop.f32.mrf.mxu0  ;;  %v1033_v5 = vpop.f32.mrf.mxu1 }
 0x290   : > { %v751_v8 = vmax.f32 %v1027_v4, 0.0  ;;  %v755_v22 = vmax.f32 %v1033_v5, 0.0 }
 0x291   : > { %v711_v6 = vpop.f32.mrf.mxu0  ;;  %v731_v7 = vpop.f32.mrf.mxu1 }
 0x292   : > { %v750_v9 = vmax.f32 %v711_v6, 0.0  ;;  %v754_v14 = vmax.f32 %v731_v7, 0.0  ;;  %v766_v20 = vmul.f32 %v943_v11, %v751_v8  ;;  %v770_v30 = vmul.f32 %v943_v11, %v755_v22 }
 0x293   : > { %v1030_v10 = vpop.f32.mrf.mxu0  ;;  %v1036_v12 = vpop.f32.mrf.mxu1 }
 0x294   : > { %v765_v13 = vmul.f32 %v943_v11, %v750_v9  ;;  %v753_v17 = vmax.f32 %v1030_v10, 0.0  ;;  %v769_v23 = vmul.f32 %v943_v11, %v754_v14  ;;  %v776_v25 = vsel %vm322_vm1, %v766_v20, 0.0 }
 0x295   : > { %v721_v15 = vpop.f32.mrf.mxu0  ;;  %v741_v16 = vpop.f32.mrf.mxu1  ;;  %v757_v28 = vmax.f32 %v1036_v12, 0.0  ;;  %v788_v33 = vsel %vm322_vm1, %v770_v30, 0.0 }
 0x296   : > { %v752_v18 = vmax.f32 %v721_v15, 0.0  ;;  %v773_v19 = vsel %vm322_vm1, %v765_v13, 0.0  ;;  %v756_v24 = vmax.f32 %v741_v16, 0.0  ;;  %v768_v27 = vmul.f32 %v943_v11, %v753_v17 }
 0x297   : > { %774 = vadd.xlane.f32.xlu0 %v773_v19  ;;  %v785_v29 = vsel %vm322_vm1, %v769_v23, 0.0  ;;  %v772_v35 = vmul.f32 %v943_v11, %v757_v28 }
 0x298   : > { %v767_v21 = vmul.f32 %v943_v11, %v752_v18  ;;  %v771_v31 = vmul.f32 %v943_v11, %v756_v24  ;;  %v782_v32 = vsel %vm322_vm1, %v768_v27, 0.0 }
 0x299   : > { %v794_v36 = vsel %vm322_vm1, %v772_v35, 0.0 }
 0x29a   : > { %v779_v26 = vsel %vm322_vm1, %v767_v21, 0.0  ;;  %v791_v34 = vsel %vm322_vm1, %v771_v31, 0.0 }
 0x29b   : > { %777 = vadd.xlane.f32.xlu0 %v776_v25  ;;  %780 = vadd.xlane.f32.xlu1 %v779_v26 }
 0x29f   : > { %783 = vadd.xlane.f32.xlu1 %v782_v32  ;;  %786 = vadd.xlane.f32.xlu0 %v785_v29 }
 0x2a3   : > { %789 = vadd.xlane.f32.xlu1 %v788_v33  ;;  %792 = vadd.xlane.f32.xlu0 %v791_v34 }
 0x2a7   : > { %795 = vadd.xlane.f32.xlu1 %v794_v36 }
 0x320   : > { %v775_v38 = vpop.xlane.xlu0 %774 }
 0x321   : > { %v799_v39 = vadd.f32 %v798_v37, %v775_v38 }
 0x323   : > { %807 = vxpose.xlu0.b32.start [1/8] (short) (narrow) %v799_v39, 8 }
 0x324   : > { %v778_v40 = vpop.xlane.xlu0 %777  ;;  %v781_v41 = vpop.xlane.xlu1 %780 }
 0x325   : > { %v800_v42 = vadd.f32 %v798_v37, %v778_v40  ;;  %v801_v43 = vadd.f32 %v798_v37, %v781_v41 }
 0x327   : > { %808 = vxpose.xlu0.b32.cont [2/8] (short) (narrow) %v800_v42, 8 }
 0x328   : > { %v784_v44 = vpop.xlane.xlu1 %783  ;;  %v787_v46 = vpop.xlane.xlu0 %786 }
 0x329   : > { %v802_v45 = vadd.f32 %v798_v37, %v784_v44  ;;  %v803_v47 = vadd.f32 %v798_v37, %v787_v46 }
 0x32b   : > { %809 = vxpose.xlu0.b32.cont [3/8] (short) (narrow) %v801_v43, 8 }
 0x32c   : > { %v790_v48 = vpop.xlane.xlu1 %789  ;;  %v793_v50 = vpop.xlane.xlu0 %792 }
 0x32d   : > { %v804_v49 = vadd.f32 %v798_v37, %v790_v48  ;;  %v805_v51 = vadd.f32 %v798_v37, %v793_v50 }
 0x32f   : > { %810 = vxpose.xlu0.b32.cont [4/8] (short) (narrow) %v802_v45, 8 }
 0x330   : > { %v796_v52 = vpop.xlane.xlu1 %795 }
 0x331   : > { %v806_v53 = vadd.f32 %v798_v37, %v796_v52 }
 0x333   : > { %811 = vxpose.xlu0.b32.cont [5/8] (short) (narrow) %v803_v47, 8 }
 0x337   : > { %812 = vxpose.xlu0.b32.cont [6/8] (short) (narrow) %v804_v49, 8 }
 0x33b   : > { %813 = vxpose.xlu0.b32.cont [7/8] (short) (narrow) %v805_v51, 8 }
 0x33f   : > { %814 = vxpose.xlu0.b32.end [8/8] (short) (narrow) %v806_v53, 8 }
 0x39f   : > { %v823_v54 = vpop.trf.xlu0 }
 0x3a0   : > { %840 = vst.msk [vmem:[%s299_s24] sm:$0x1] %vm839_vm3, %v823_v54 }
 0x3a1   : > { %1122 = shalt.err (!%p1119_p3)
}
 0x3a2   : > { %s1123_s19 = scalar_lea.hbm %s1352_s28, 16  ;;  %s1127_s22 = scalar_lea.hbm %s1395_s8, 32 }
 0x3a3   : > { %p1124_p4 = scmp.ne.s32.totalorder %s1352_s28, %s1123_s19  ;;  %p1128_p9 = scmp.lt.s32.totalorder %s1352_s28, %s1395_s8 }
 0x3a4   : > { %p1129_p10 = scmp.lt.s32.totalorder %s1127_s22, %s1123_s19 }
 0x3a5   : > { %p1125_p7 = pnand %p1124_p4, %p1258_p5 }
 0x3a6   : > { %p1130_p11 = por %p1129_p10, %p1128_p9 }
 0x3a7   : > { %p1126_p8 = pneg %p1125_p7 }
 0x3a9   : > { %p1131_p12 = pnand %p1130_p11, %p1126_p8 }
 0x3ab   : > { %1134 = shalt.err (!%p1131_p12)
}
 0x3ac   : > { %1053 = dma.vmem_to_hbm [thread:$0]  (%p1258_p5), %s855_s25, 16, %s1352_s28, %s842_s11  }
 0x3ad PF: > { %p1059_p13 = scmp.ge.s32.totalorder %s1169_s10, 2  ;;  %s866_s26 = sand.u32 1, %s1157_s29  }
 0x3ae   : > { %s867_s27 = scalar_lea.sflag [#allocation4], %s866_s26 }
 0x3af   : > { %p1056_p0 = pnand %p1059_p13, %p1262_p6 }
 0x3b1   : > { %p1057_p1 = pneg %p1056_p0 }
 0x3b3   : > { %1152 = dma.done.wait (%p1057_p1), %s867_s27, 16  }
 0x3b4   : > { %1154 = vsyncadd (%p1057_p1), %s867_s27, 4294967280  ;;  %p19_p2 = scmp.ge.s32.totalorder %s1245_s12, 4   ;;  %s1398_s29 = smov %s1161_s30 }
 0x3b5   : > { %s1399_s30 = smov %s1165_s9  ;;  %s1400_s9 = smov %s1256_s15 }
 0x3b6   : > { %s1401_s10 = smov %s1245_s12  ;;  %21 = sbr.rel (!%p19_p2) target bundleno = 5 (0x5), region = 87 }
 0x3bb   :  { %871 = vsyncpa [#allocation4], 1 }
 0x3bc   :  { %873 = vsyncpa [#allocation4 + $0x1], 1 }

</bundles_post_ra>
